<compile_context>
chip_gen: v5e
topology: v5e:2x2
jax: 0.10.0
libtpu: 0.0.40
codegen_flags: <defaults>
</compile_context>

<pallas_src>
import functools

import jax
import jax.numpy as jnp
from jax.experimental import pallas as pl
from jax.experimental.pallas import tpu as pltpu


def _round_up(x, m):
    return ((x + m - 1) // m) * m


def autoencoder_kernel(x_ref, w_enc_ref, b_enc_ref, w_dec_ref, b_dec_ref, out_ref):
    # x_ref:     (TB, I)        batch tile (compute dtype, e.g. bf16)
    # w_enc_ref: (I, H)  pre-transposed encoder weight   b_enc_ref: (1, H) f32
    # w_dec_ref: (H, O)  pre-transposed decoder weight   b_dec_ref: (1, O) f32
    # out_ref:   (TB, O)
    x = x_ref[...]

    # Encoder: (TB, I) @ (I, H) -> f32 accumulate on the MXU, bias add in f32.
    u = jnp.dot(x, w_enc_ref[...], preferred_element_type=jnp.float32)
    u = u + b_enc_ref[...].astype(jnp.float32)

    # Decoder: cast activations back to the weight compute dtype (bf16 default)
    # so the MXU runs at full rate; accumulate in f32.
    v = jnp.dot(u.astype(w_dec_ref.dtype), w_dec_ref[...],
                preferred_element_type=jnp.float32)
    v = v + b_dec_ref[...].astype(jnp.float32)

    out_ref[...] = v.astype(out_ref.dtype)


def prepare_params(w_enc, b_enc, w_dec, b_dec, compute_dtype=jnp.bfloat16):
    """One-time layout/dtype prep. Call ONCE and reuse — not per forward.

    PyTorch layout in:  w_enc (H, I), b_enc (H,), w_dec (O, H), b_dec (O,)
    Returns MXU-natural operands: W_enc^T (I, H), b_enc (1, H),
                                  W_dec^T (H, O), b_dec (1, O).
    """
    w_enc_t = w_enc.T
    w_dec_t = w_dec.T
    if compute_dtype is not None:
        w_enc_t = w_enc_t.astype(compute_dtype)
        w_dec_t = w_dec_t.astype(compute_dtype)
    b_enc2 = b_enc.reshape(1, -1).astype(jnp.float32)
    b_dec2 = b_dec.reshape(1, -1).astype(jnp.float32)
    return w_enc_t, b_enc2, w_dec_t, b_dec2


def autoencoder_forward(x, w_enc_t, b_enc2, w_dec_t, b_dec2, *,
                        batch_tile=512,
                        min_grid_steps=4,
                        out_dtype=None,
                        max_vmem_bytes=56 * 1024 * 1024):
    """Forward pass given prepare_params() outputs. x: (B, input_size)."""
    B, input_size = x.shape
    hidden_size = w_enc_t.shape[1]
    output_size = w_dec_t.shape[1]
    if out_dtype is None:
        out_dtype = x.dtype
    compute_dtype = w_enc_t.dtype

    # Match operand dtype of the (pre-cast) weights; the per-call cast of x is
    # cheap relative to the weight casts we've hoisted out.
    x = x.astype(compute_dtype)

    # Batch tiling: multiple of 8 sublanes; clamp so the grid keeps at least
    # `min_grid_steps` steps (v7x megacore sharding + pipeline overlap room).
    tb = max(8, _round_up(min(int(batch_tile), _round_up(B, 8)), 8))
    tb_cap = max(8, _round_up(pl.cdiv(B, min_grid_steps), 8))
    tb = min(tb, tb_cap)
    b_pad = _round_up(B, tb)
    if b_pad != B:
        x = jnp.pad(x, ((0, b_pad - B), (0, 0)))
    grid = (b_pad // tb,)

    # VMEM budget from the actual footprint (weights + biases resident once,
    # double-buffered X/out tiles, f32 intermediates) + headroom.
    cbytes = jnp.dtype(compute_dtype).itemsize
    obytes = jnp.dtype(out_dtype).itemsize
    resident = (input_size * hidden_size + hidden_size * output_size) * cbytes \
        + (hidden_size + output_size) * 4
    tile_bytes = 2 * tb * input_size * cbytes + 2 * tb * output_size * obytes
    work_bytes = tb * hidden_size * 4 + tb * output_size * 4
    vmem_needed = resident + tile_bytes + work_bytes + (4 << 20)
    vmem_limit = min(int(max_vmem_bytes), max(int(vmem_needed), 16 << 20))
    if resident + tile_bytes + work_bytes > max_vmem_bytes:
        # TODO(synk): implement K/N-tiled weight path for SAE-scale models.
        raise ValueError(
            "weights + tiles exceed the VMEM budget; reduce batch_tile or add "
            "a K/N-tiled weight variant")

    out = pl.pallas_call(
        autoencoder_kernel,
        out_shape=jax.ShapeDtypeStruct((b_pad, output_size), out_dtype),
        grid_spec=pltpu.PrefetchScalarGridSpec(
            num_scalar_prefetch=0,
            grid=grid,
            in_specs=[
                # X tile: pipelined / double-buffered over the batch grid.
                pl.BlockSpec((tb, input_size), lambda i: (i, 0)),
                # Grid-invariant operands: whole-array resident in VMEM,
                # fetched once (no per-step re-DMA / double buffering).
                pl.BlockSpec(memory_space=pltpu.MemorySpace.VMEM),  # W_enc^T
                pl.BlockSpec(memory_space=pltpu.MemorySpace.VMEM),  # b_enc
                pl.BlockSpec(memory_space=pltpu.MemorySpace.VMEM),  # W_dec^T
                pl.BlockSpec(memory_space=pltpu.MemorySpace.VMEM),  # b_dec
            ],
            out_specs=pl.BlockSpec((tb, output_size), lambda i: (i, 0)),
        ),
        compiler_params=pltpu.CompilerParams(
            dimension_semantics=("parallel",),
            vmem_limit_bytes=vmem_limit,
        ),
    )(x, w_enc_t, b_enc2, w_dec_t, b_dec2)

    return out[:B] if b_pad != B else out


def autoencoder_linear(x, w_enc, b_enc, w_dec, b_dec, *,
                       compute_dtype=jnp.bfloat16, **kwargs):
    """Convenience one-shot wrapper (PyTorch-layout weights).

    For repeated/jitted forwards, call prepare_params() once and reuse
    autoencoder_forward() so the transpose/cast stays off the hot path.
    """
    params = prepare_params(w_enc, b_enc, w_dec, b_dec, compute_dtype)
    return autoencoder_forward(x, *params, **kwargs)


def init_params(key, input_size, hidden_size, output_size, dtype=jnp.float32):
    # PyTorch-style Linear init: U(-1/sqrt(fan_in), 1/sqrt(fan_in)).
    k1, k2, k3, k4 = jax.random.split(key, 4)
    bound_e = 1.0 / (input_size ** 0.5)
    bound_d = 1.0 / (hidden_size ** 0.5)
    w_enc = jax.random.uniform(k1, (hidden_size, input_size), dtype,
                               minval=-bound_e, maxval=bound_e)
    b_enc = jax.random.uniform(k2, (hidden_size,), dtype,
                               minval=-bound_e, maxval=bound_e)
    w_dec = jax.random.uniform(k3, (output_size, hidden_size), dtype,
                               minval=-bound_d, maxval=bound_d)
    b_dec = jax.random.uniform(k4, (output_size,), dtype,
                               minval=-bound_d, maxval=bound_d)
    return w_enc, b_enc, w_dec, b_dec


if __name__ == "__main__":
    # Lane-dense dims (multiples of 128); B=512 with the min-grid-steps clamp
    # gives tb=128 and a 4-step "parallel" grid (both v7x TCs busy, pipelined).
    batch, input_size, hidden_size, output_size = 512, 256, 128, 256

    key = jax.random.PRNGKey(0)
    kx, kp = jax.random.split(key)
    x = jax.random.normal(kx, (batch, input_size), jnp.float32)
    w_enc, b_enc, w_dec, b_dec = init_params(kp, input_size, hidden_size, output_size)

    # One-time param prep (transpose + bf16 cast off the hot path), then a
    # jitted forward that only runs the Pallas kernel.
    params = prepare_params(w_enc, b_enc, w_dec, b_dec, compute_dtype=jnp.bfloat16)
    fwd = jax.jit(functools.partial(autoencoder_forward, batch_tile=512))
    out = jax.block_until_ready(fwd(x, *params))

    # Reference mirroring the kernel's dtype strategy (bf16 operands, f32 acc).
    xc = x.astype(jnp.bfloat16)
    u_ref = jnp.dot(xc, w_enc.T.astype(jnp.bfloat16),
                    preferred_element_type=jnp.float32) + b_enc
    v_ref = jnp.dot(u_ref.astype(jnp.bfloat16), w_dec.T.astype(jnp.bfloat16),
                    preferred_element_type=jnp.float32) + b_dec

    assert out.shape == (batch, output_size)
    assert out.dtype == x.dtype
    assert jnp.allclose(out, v_ref, atol=1e-2, rtol=1e-2), "mismatch vs bf16 reference"

    # Loose sanity check vs full-f32 math (expected bf16 precision loss only).
    u_f32 = jnp.dot(x, w_enc.T, precision="highest") + b_enc
    v_f32 = jnp.dot(u_f32, w_dec.T, precision="highest") + b_dec
    assert jnp.allclose(out, v_f32, atol=6e-2, rtol=6e-2), "mismatch vs f32 reference"

    print("KERNEL_OK")
</pallas_src>

<mosaic_0001>
module attributes {stable_mosaic.version = 11 : i64} {
  func.func @autoencoder_kernel(%arg0: i32, %arg1: memref<128x256xbf16, #tpu.memory_space<vmem>>, %arg2: memref<256x128xbf16, #tpu.memory_space<vmem>>, %arg3: memref<1x128xf32, #tpu.memory_space<vmem>>, %arg4: memref<128x256xbf16, #tpu.memory_space<vmem>>, %arg5: memref<1x256xf32, #tpu.memory_space<vmem>>, %arg6: memref<128x256xf32, #tpu.memory_space<vmem>>) attributes {dimension_semantics = [#tpu.dimension_semantics<parallel>], iteration_bounds = array<i64: 4>, scalar_prefetch = 0 : i64, scratch_operands = 0 : i64, tpu.core_type = #tpu.core_type<tc>, window_params = [{transform_indices = @transform_0, window_bounds = array<i64: 128, 256>}, {pipeline_mode = #tpu.pipeline_mode<synchronous>, transform_indices = @transform_1, window_bounds = array<i64: 256, 128>}, {pipeline_mode = #tpu.pipeline_mode<synchronous>, transform_indices = @transform_2, window_bounds = array<i64: 1, 128>}, {pipeline_mode = #tpu.pipeline_mode<synchronous>, transform_indices = @transform_3, window_bounds = array<i64: 128, 256>}, {pipeline_mode = #tpu.pipeline_mode<synchronous>, transform_indices = @transform_4, window_bounds = array<i64: 1, 256>}, {transform_indices = @transform_5, window_bounds = array<i64: 128, 256>}]} {
    %c0 = arith.constant 0 : index
    %c0_0 = arith.constant 0 : index
    %0 = vector.load %arg1[%c0, %c0_0] : memref<128x256xbf16, #tpu.memory_space<vmem>>, vector<128x256xbf16>
    %c0_1 = arith.constant 0 : index
    %c0_2 = arith.constant 0 : index
    %1 = vector.load %arg2[%c0_1, %c0_2] : memref<256x128xbf16, #tpu.memory_space<vmem>>, vector<256x128xbf16>
    %cst = arith.constant dense<0.000000e+00> : vector<128x128xf32>
    %2 = tpu.matmul %0, %1, %cst {dimension_numbers = #tpu.dot_dimension_numbers<[1], [0], [0], [1], [0, 0, 1, 1], [], []>} : vector<128x256xbf16>, vector<256x128xbf16>, vector<128x128xf32> -> vector<128x128xf32>
    %c0_3 = arith.constant 0 : index
    %c0_4 = arith.constant 0 : index
    %3 = vector.load %arg3[%c0_3, %c0_4] : memref<1x128xf32, #tpu.memory_space<vmem>>, vector<1x128xf32>
    %4 = vector.broadcast %3 : vector<1x128xf32> to vector<128x128xf32>
    %5 = arith.addf %2, %4 : vector<128x128xf32>
    %6 = arith.truncf %5 : vector<128x128xf32> to vector<128x128xbf16>
    %c0_5 = arith.constant 0 : index
    %c0_6 = arith.constant 0 : index
    %7 = vector.load %arg4[%c0_5, %c0_6] : memref<128x256xbf16, #tpu.memory_space<vmem>>, vector<128x256xbf16>
    %cst_7 = arith.constant dense<0.000000e+00> : vector<128x256xf32>
    %8 = tpu.matmul %6, %7, %cst_7 {dimension_numbers = #tpu.dot_dimension_numbers<[1], [0], [0], [1], [0, 0, 1, 1], [], []>} : vector<128x128xbf16>, vector<128x256xbf16>, vector<128x256xf32> -> vector<128x256xf32>
    %c0_8 = arith.constant 0 : index
    %c0_9 = arith.constant 0 : index
    %9 = vector.load %arg5[%c0_8, %c0_9] : memref<1x256xf32, #tpu.memory_space<vmem>>, vector<1x256xf32>
    %10 = vector.broadcast %9 : vector<1x256xf32> to vector<128x256xf32>
    %11 = arith.addf %8, %10 : vector<128x256xf32>
    %c0_10 = arith.constant 0 : index
    %c0_11 = arith.constant 0 : index
    %12 = vector.load %arg6[%c0_10, %c0_11] : memref<128x256xf32, #tpu.memory_space<vmem>>, vector<128x256xf32>
    tpu.vector_store %arg6[%c0_10, %c0_11], %11 {strides = array<i32>} : memref<128x256xf32, #tpu.memory_space<vmem>>, vector<128x256xf32>,
    return
  }
  func.func @transform_0(%arg0: i32) -> (i32, i32) {
    %c0_i32 = arith.constant 0 : i32
    %c0_i32_0 = arith.constant 0 : i32
    return %arg0, %c0_i32 : i32, i32
  }
  func.func @transform_1(%arg0: i32) -> (i32, i32) {
    %c0_i32 = arith.constant 0 : i32
    %c0_i32_0 = arith.constant 0 : i32
    %c0_i32_1 = arith.constant 0 : i32
    return %c0_i32, %c0_i32_0 : i32, i32
  }
  func.func @transform_2(%arg0: i32) -> (i32, i32) {
    %c0_i32 = arith.constant 0 : i32
    %c0_i32_0 = arith.constant 0 : i32
    %c0_i32_1 = arith.constant 0 : i32
    return %c0_i32, %c0_i32_0 : i32, i32
  }
  func.func @transform_3(%arg0: i32) -> (i32, i32) {
    %c0_i32 = arith.constant 0 : i32
    %c0_i32_0 = arith.constant 0 : i32
    %c0_i32_1 = arith.constant 0 : i32
    return %c0_i32, %c0_i32_0 : i32, i32
  }
  func.func @transform_4(%arg0: i32) -> (i32, i32) {
    %c0_i32 = arith.constant 0 : i32
    %c0_i32_0 = arith.constant 0 : i32
    %c0_i32_1 = arith.constant 0 : i32
    return %c0_i32, %c0_i32_0 : i32, i32
  }
  func.func @transform_5(%arg0: i32) -> (i32, i32) {
    %c0_i32 = arith.constant 0 : i32
    %c0_i32_0 = arith.constant 0 : i32
    return %arg0, %c0_i32 : i32, i32
  }
}

</mosaic_0001>

<bundles_post_ra>
// kernel: autoencoder_forward.1
= control target key start
LH: loop header
LB: loop body
LE: loop exit
PB: predicated region body
PF: predicated region fallthrough
CT: control target
= control target key end

     0   :  { %10 = vsyncpa [#allocation3], 0  ;;  %s1630_s0 = inlined_call_operand.vmem [shape: bf16[512,256], index: 0, kind: input, shape index: {}]   ;;  %s1631_s1 = inlined_call_operand.vmem [shape: bf16[256,128], index: 1, kind: input, shape index: {}]   ;;  %s1632_s2 = inlined_call_operand.vmem [shape: f32[1,128], index: 2, kind: input, shape index: {}]   ;;  %s1633_s3 = inlined_call_operand.vmem [shape: bf16[128,256], index: 3, kind: input, shape index: {}]   ;;  %s1634_s4 = inlined_call_operand.vmem [shape: f32[1,256], index: 4, kind: input, shape index: {}]   ;;  %s1635_s5 = inlined_call_operand.hbm [shape: f32[512,256], index: 5, kind: output, shape index: {}]  }
   0x1   :  { %12 = vsyncpa [#allocation3 + $0x1], 0  ;;  %s1269_s18 = smov 0   ;;  %s1271_s19 = smov 0  }
   0x2   :  { %s1273_s20 = smov 0   ;;  %s1275_s21 = smov 0  }
   0x3 LB: > { %s1290_s22 = sadd.s32 4294967295, %s1235_s21   ;;  %s874_s23 = sadd.s32 4294967294, %s1235_s21   ;;  %s1235_s21 = sphi %s1275_s21, %s1641_s21   ;;  %s1231_s20 = sphi %s1273_s20, %s1640_s20   ;;  %s1227_s19 = sphi %s1271_s19, %s1639_s19   ;;  %s1223_s18 = sphi %s1269_s18, %s1638_s18  }
   0x4   : > { %s1294_s24 = sadd.s32 1, %s1235_s21   ;;  %s135_s25 = sadd.s32 1, %s1231_s20 }
   0x5   : > { %s132_s26 = ssub.s32 %s1235_s21, %s1294_s24  ;;  %p145_p0 = scmp.ne.s32.totalorder %s1231_s20, %s1227_s19 }
   0x6   : > { %p133_p1 = scmp.eq.s32.totalorder %s132_s26, 0  ;;  %p146_p2 = scmp.eq.s32.totalorder %s1290_s22, 3 }
   0x7   : > { %p151_p3 = scmp.ne.s32.totalorder %s1227_s19, %s1223_s18  ;;  %p152_p4 = scmp.eq.s32.totalorder %s874_s23, 3 }
   0x8   : > { %s1305_s27 = scalar_select %p133_p1, %s1231_s20, %s135_s25  }
   0x9   : > { %p1307_p5 = por %p146_p2, %p145_p0  ;;  %p1311_p6 = por %p152_p4, %p151_p3 }
   0xa   : > { %p877_p7 = scmp.ge.s32.totalorder %s1235_s21, 1  ;;  %p192_p8 = scmp.lt.s32.totalorder %s1235_s21, 5 }
   0xc   : > { %p193_p9 = pnand %p877_p7, %p192_p8 }
   0xd   : > { %s879_s17 = sshll.u32 (!%p193_p9), %s1290_s22, 4  ;;  %s1130_s30 = sshll.u32 (!%p193_p9), %s1290_s22, 8 }
   0xe   : > { %196 = sbr.rel (%p193_p9) target bundleno = 450 (0x1c2), region = 40  ;;  %p222_p10 = scmp.lt.s32.totalorder (!%p193_p9), %s879_s17, 63 }
   0xf   : > { %s1193_s15 = scalar_lea.hbm (!%p193_p9), %s1635_s5, 1024 }
  0x13   : > { %v1104_v0 = vld [vmem:[%s1631_s1 + $0x38] sm:$0xff]  ;;  %v1103_v2 = vld [vmem:[%s1631_s1 + $0x30] sm:$0xff]  ;;  %v1102_v4 = vld [vmem:[%s1631_s1 + $0x28] sm:$0xff]  ;;  %s1643_s17 = smov (!%p222_p10, %s879_s17), 63 }
  0x14   : > { %v1112_v1 = vld [vmem:[%s1631_s1 + $0x78] sm:$0xff]  ;;  %457 = vmatpush.bf16.msra.mxu0 %v1104_v0  ;;  %v1111_v3 = vld [vmem:[%s1631_s1 + $0x70] sm:$0xff]  ;;  %v1110_v5 = vld [vmem:[%s1631_s1 + $0x68] sm:$0xff]  ;;  %s1080_s14 = sshll.u32 %s1643_s17, 3  ;;  %s808_s17 = scalar_lea.hbm %s1635_s5, %s1130_s30 }
  0x15   : > { %506 = vmatpush.bf16.msra.mxu1 %v1112_v1  ;;  %v1101_v6 = vld [vmem:[%s1631_s1 + $0x20] sm:$0xff]  ;;  %v1100_v8 = vld [vmem:[%s1631_s1 + $0x18] sm:$0xff]  ;;  %v1099_v10 = vld [vmem:[%s1631_s1 + $0x10] sm:$0xff]  ;;  %s1363_s6 = scalar_lea.vmem %s1630_s0, %s1080_s14  ;;  %s811_s10 = sshll.u32 %s808_s17, 4  ;;  %s812_s10 = int_to_ptr.hbm [resolvable:$true] %s811_s10 }
  0x16   : > { %v1109_v7 = vld [vmem:[%s1631_s1 + $0x60] sm:$0xff]  ;;  %v1108_v9 = vld [vmem:[%s1631_s1 + $0x58] sm:$0xff]  ;;  %v1107_v11 = vld [vmem:[%s1631_s1 + $0x50] sm:$0xff]  ;;  %s1187_s11 = sshra.s32 %s812_s10, 4  ;;  %s1188_s11 = int_to_ptr.hbm [resolvable:$true] %s1187_s11 }
  0x17   : > { %v1098_v12 = vld [vmem:[%s1631_s1 + $0x8] sm:$0xff]  ;;  %v1097_v14 = vld [vmem:[%s1631_s1] sm:$0xff]  ;;  %v892_v22 = vld [vmem:[%s1363_s6 + $0x10] sm:$0xf]  ;;  %s1189_s12 = scalar_lea.hbm %s1188_s11, 256  ;;  %p1194_p0 = scmp.lt.s32.totalorder %s1188_s11, %s1635_s5 }
  0x18   : > { %458 = vmatpush.bf16.msra.mxu0 %v1103_v2  ;;  %v1106_v13 = vld [vmem:[%s1631_s1 + $0x48] sm:$0xff]  ;;  %v1105_v15 = vld [vmem:[%s1631_s1 + $0x40] sm:$0xff]  ;;  %v1084_v23 = vld [vmem:[%s1363_s6 + $0x14] sm:$0xf0]  ;;  %p1190_p11 = scmp.ne.s32.totalorder %s1188_s11, %s1189_s12  ;;  %p1195_p1 = scmp.lt.s32.totalorder %s1193_s15, %s1189_s12 }
  0x19   : > { %507 = vmatpush.bf16.msra.mxu1 %v1111_v3  ;;  %v884_v16 = vld [vmem:[%s1363_s6] sm:$0xf]  ;;  %v1082_v17 = vld [vmem:[%s1363_s6 + $0x4] sm:$0xf0]  ;;  %v1081_v18 = vld [vmem:[%s1363_s6 + $0x4] sm:$0xf]  ;;  %v893_v26 = vor.u32 %v1084_v23, %v892_v22 }
  0x1a   : > { %v886_v19 = vld [vmem:[%s1363_s6 + $0x8] sm:$0xf0]  ;;  %v885_v20 = vor.u32 %v1082_v17, %v884_v16  ;;  %v1083_v24 = vld [vmem:[%s1363_s6 + $0x14] sm:$0xf]  ;;  %v894_v25 = vld [vmem:[%s1363_s6 + $0x18] sm:$0xf0]  ;;  %p1191_p12 = pnand %p1190_p11, %p1307_p5  ;;  %p1196_p2 = por %p1195_p1, %p1194_p0 }
  0x1b   : > { %v889_v21 = vor.u32 %v1081_v18, %v886_v19  ;;  %v897_v27 = vor.u32 %v1083_v24, %v894_v25  ;;  %v900_v28 = vld [vmem:[%s1363_s6 + $0x20] sm:$0xf]  ;;  %v1086_v29 = vld [vmem:[%s1363_s6 + $0x24] sm:$0xf0]  ;;  %v1085_v30 = vld [vmem:[%s1363_s6 + $0x24] sm:$0xf] }
  0x1c   : > { %459 = vmatpush.bf16.msra.mxu0 %v1102_v4  ;;  %v902_v31 = vld [vmem:[%s1363_s6 + $0x28] sm:$0xf0]  ;;  %v901_v32 = vor.u32 %v1086_v29, %v900_v28  ;;  %v908_v34 = vld [vmem:[%s1363_s6 + $0x30] sm:$0xf]  ;;  %v1088_v35 = vld [vmem:[%s1363_s6 + $0x34] sm:$0xf0]  ;;  %p1192_p13 = pneg %p1191_p12 }
  0x1d   : > { %508 = vmatpush.bf16.msra.mxu1 %v1110_v5  ;;  %v905_v33 = vor.u32 %v1085_v30, %v902_v31  ;;  %v1087_v36 = vld [vmem:[%s1363_s6 + $0x34] sm:$0xf]  ;;  %v910_v37 = vld [vmem:[%s1363_s6 + $0x38] sm:$0xf0]  ;;  %v909_v38 = vor.u32 %v1088_v35, %v908_v34  ;;  %v916_v40 = vld [vmem:[%s1363_s6 + $0x40] sm:$0xf] }
  0x1e   : > { %v913_v39 = vor.u32 %v1087_v36, %v910_v37  ;;  %v1090_v41 = vld [vmem:[%s1363_s6 + $0x44] sm:$0xf0]  ;;  %v1089_v42 = vld [vmem:[%s1363_s6 + $0x44] sm:$0xf]  ;;  %v918_v43 = vld [vmem:[%s1363_s6 + $0x48] sm:$0xf0]  ;;  %p1197_p3 = pnand %p1196_p2, %p1192_p13 }
  0x1f   : > { %v917_v44 = vor.u32 %v1090_v41, %v916_v40  ;;  %v921_v45 = vor.u32 %v1089_v42, %v918_v43  ;;  %v1068_v46 = vld [vmem:[%s1633_s3 + $0x70] sm:$0xf]  ;;  %v1128_v47 = vld [vmem:[%s1633_s3 + $0x74] sm:$0xf0]  ;;  %v1127_v48 = vld [vmem:[%s1633_s3 + $0x74] sm:$0xf] }
  0x20   : > { %460 = vmatpush.bf16.msra.mxu0 %v1101_v6  ;;  %v1069_v49 = vor.u32 %v1128_v47, %v1068_v46  ;;  %v1070_v50 = vld [vmem:[%s1633_s3 + $0x78] sm:$0xf0]  ;;  %v924_v52 = vld [vmem:[%s1363_s6 + $0x50] sm:$0xf]  ;;  %v1092_v53 = vld [vmem:[%s1363_s6 + $0x54] sm:$0xf0] }
  0x21   : > { %509 = vmatpush.bf16.msra.mxu1 %v1109_v7  ;;  %v1073_v51 = vor.u32 %v1127_v48, %v1070_v50  ;;  %v1091_v54 = vld [vmem:[%s1363_s6 + $0x54] sm:$0xf]  ;;  %v926_v55 = vld [vmem:[%s1363_s6 + $0x58] sm:$0xf0]  ;;  %v925_v56 = vor.u32 %v1092_v53, %v924_v52  ;;  %v1060_v58 = vld [vmem:[%s1633_s3 + $0x60] sm:$0xf] }
  0x22   : > { %665 = vmatpush.bf16.msra.mxu2 %v1069_v49  ;;  %v929_v57 = vor.u32 %v1091_v54, %v926_v55  ;;  %v1126_v59 = vld [vmem:[%s1633_s3 + $0x64] sm:$0xf0]  ;;  %v1125_v60 = vld [vmem:[%s1633_s3 + $0x64] sm:$0xf]  ;;  %v1062_v62 = vld [vmem:[%s1633_s3 + $0x68] sm:$0xf0] }
  0x23   : > { %714 = vmatpush.bf16.msra.mxu3 %v1073_v51  ;;  %v1061_v61 = vor.u32 %v1126_v59, %v1060_v58  ;;  %v1065_v63 = vor.u32 %v1125_v60, %v1062_v62  ;;  %v1052_v0 = vld [vmem:[%s1633_s3 + $0x50] sm:$0xf]  ;;  %v1124_v1 = vld [vmem:[%s1633_s3 + $0x54] sm:$0xf0]  ;;  %v1123_v2 = vld [vmem:[%s1633_s3 + $0x54] sm:$0xf] }
  0x24   : > { %461 = vmatpush.bf16.msra.mxu0 %v1100_v8  ;;  %v1053_v3 = vor.u32 %v1124_v1, %v1052_v0  ;;  %v1054_v4 = vld [vmem:[%s1633_s3 + $0x58] sm:$0xf0]  ;;  %v1044_v6 = vld [vmem:[%s1633_s3 + $0x40] sm:$0xf]  ;;  %v1122_v7 = vld [vmem:[%s1633_s3 + $0x44] sm:$0xf0] }
  0x25   : > { %510 = vmatpush.bf16.msra.mxu1 %v1108_v9  ;;  %v1057_v5 = vor.u32 %v1123_v2, %v1054_v4  ;;  %v1121_v8 = vld [vmem:[%s1633_s3 + $0x44] sm:$0xf]  ;;  %v1046_v9 = vld [vmem:[%s1633_s3 + $0x48] sm:$0xf0]  ;;  %v1036_v16 = vld [vmem:[%s1633_s3 + $0x30] sm:$0xf] }
  0x26   : > { %666 = vmatpush.bf16.msra.mxu2 %v1061_v61  ;;  %v1120_v17 = vld [vmem:[%s1633_s3 + $0x34] sm:$0xf0]  ;;  %v1119_v18 = vld [vmem:[%s1633_s3 + $0x34] sm:$0xf]  ;;  %v1028_v24 = vld [vmem:[%s1633_s3 + $0x20] sm:$0xf] }
  0x27   : > { %715 = vmatpush.bf16.msra.mxu3 %v1065_v63  ;;  %v1037_v19 = vor.u32 %v1120_v17, %v1036_v16  ;;  %v1118_v25 = vld [vmem:[%s1633_s3 + $0x24] sm:$0xf0]  ;;  %v1030_v28 = vld [vmem:[%s1633_s3 + $0x28] sm:$0xf0]  ;;  %v1020_v30 = vld [vmem:[%s1633_s3 + $0x10] sm:$0xf] }
  0x28   : > { %462 = vmatpush.bf16.msra.mxu0 %v1099_v10  ;;  %v1045_v10 = vor.u32 %v1122_v7, %v1044_v6  ;;  %v1116_v31 = vld [vmem:[%s1633_s3 + $0x14] sm:$0xf0]  ;;  %v1022_v34 = vld [vmem:[%s1633_s3 + $0x18] sm:$0xf0]  ;;  %v1012_v36 = vld [vmem:[%s1633_s3] sm:$0xf] }
  0x29   : > { %511 = vmatpush.bf16.msra.mxu1 %v1107_v11  ;;  %v1049_v11 = vor.u32 %v1121_v8, %v1046_v9  ;;  %v1114_v37 = vld [vmem:[%s1633_s3 + $0x4] sm:$0xf0]  ;;  %v1014_v40 = vld [vmem:[%s1633_s3 + $0x8] sm:$0xf0]  ;;  %v940_v41 = vld [vmem:[%s1363_s6 + $0x70] sm:$0xf] }
  0x2a   : > { %667 = vmatpush.bf16.msra.mxu2 %v1053_v3  ;;  %v1096_v43 = vld [vmem:[%s1363_s6 + $0x74] sm:$0xf0]  ;;  %v1502_v50 = vld [vmem:[%s1632_s2] ss:$0 sm:$0xff] }
  0x2b   : > { %716 = vmatpush.bf16.msra.mxu3 %v1057_v5  ;;  %v941_v46 = vor.u32 %v1096_v43, %v940_v41 }
  0x2c   : > { %463 = vmatpush.bf16.msra.mxu0 %v1098_v12  ;;  %v932_v12 = vld [vmem:[%s1363_s6 + $0x60] sm:$0xf] }
  0x2d   : > { %512 = vmatpush.bf16.msra.mxu1 %v1106_v13  ;;  %v1094_v13 = vld [vmem:[%s1363_s6 + $0x64] sm:$0xf0] }
  0x2e   : > { %668 = vmatpush.bf16.msra.mxu2 %v1045_v10 }
  0x2f   : > { %717 = vmatpush.bf16.msra.mxu3 %v1049_v11 }
  0x30   : > { %464 = vmatpush.bf16.msra.mxu0 %v1097_v14  ;;  %v1093_v14 = vld [vmem:[%s1363_s6 + $0x64] sm:$0xf] }
  0x31   : > { %513 = vmatpush.bf16.msra.mxu1 %v1105_v15  ;;  %v934_v15 = vld [vmem:[%s1363_s6 + $0x68] sm:$0xf0] }
  0x32   : > { %v937_v22 = vor.u32 %v1093_v14, %v934_v15  ;;  %669 = vmatpush.bf16.msra.mxu2 %v1037_v19 }
  0x33   : > { %465 = vmatmul.bf16.vlgmr.msra.gmra.mxu0 %v885_v20  ;;  %v1038_v20 = vld [vmem:[%s1633_s3 + $0x38] sm:$0xf0] }
  0x34   : > { %514 = vmatmul.bf16.vlgmr.msra.gmra.mxu1 %v889_v21  ;;  %v933_v21 = vor.u32 %v1094_v13, %v932_v12  ;;  %v1041_v23 = vor.u32 %v1119_v18, %v1038_v20 }
  0x36   : > { %718 = vmatpush.bf16.msra.mxu3 %v1041_v23 }
  0x43   : > { %470 = vmatmul.bf16.gmra.mxu0 %v893_v26  ;;  %v1117_v26 = vld [vmem:[%s1633_s3 + $0x24] sm:$0xf] }
  0x44   : > { %519 = vmatmul.bf16.gmra.mxu1 %v897_v27  ;;  %v1029_v27 = vor.u32 %v1118_v25, %v1028_v24  ;;  %v1033_v29 = vor.u32 %v1117_v26, %v1030_v28 }
  0x46   : > { %670 = vmatpush.bf16.msra.mxu2 %v1029_v27  ;;  %719 = vmatpush.bf16.msra.mxu3 %v1033_v29 }
  0x53   : > { %475 = vmatmul.bf16.gmra.mxu0 %v901_v32  ;;  %v1115_v32 = vld [vmem:[%s1633_s3 + $0x14] sm:$0xf] }
  0x54   : > { %524 = vmatmul.bf16.gmra.mxu1 %v905_v33  ;;  %v1021_v33 = vor.u32 %v1116_v31, %v1020_v30  ;;  %v1025_v35 = vor.u32 %v1115_v32, %v1022_v34 }
  0x56   : > { %671 = vmatpush.bf16.msra.mxu2 %v1021_v33  ;;  %720 = vmatpush.bf16.msra.mxu3 %v1025_v35 }
  0x63   : > { %480 = vmatmul.bf16.gmra.mxu0 %v909_v38  ;;  %v1113_v38 = vld [vmem:[%s1633_s3 + $0x4] sm:$0xf] }
  0x64   : > { %529 = vmatmul.bf16.gmra.mxu1 %v913_v39  ;;  %v1013_v39 = vor.u32 %v1114_v37, %v1012_v36  ;;  %v1017_v42 = vor.u32 %v1113_v38, %v1014_v40 }
  0x66   : > { %672 = vmatpush.bf16.msra.mxu2 %v1013_v39  ;;  %721 = vmatpush.bf16.msra.mxu3 %v1017_v42 }
  0x73   : > { %485 = vmatmul.bf16.gmra.mxu0 %v917_v44  ;;  %v1095_v44 = vld [vmem:[%s1363_s6 + $0x74] sm:$0xf] }
  0x74   : > { %534 = vmatmul.bf16.gmra.mxu1 %v921_v45  ;;  %v942_v45 = vld [vmem:[%s1363_s6 + $0x78] sm:$0xf0]  ;;  %s218_s6 = sand.u32 1, %s1227_s19  }
  0x75   : > { %v945_v47 = vor.u32 %v1095_v44, %v942_v45  ;;  %s878_s25 = sshll.u32 %s218_s6, 8  ;;  %s796_s22 = scalar_lea.sflag [#allocation3], %s218_s6 }
  0x76   : > { %s1532_s26 = scalar_lea.vmem [#allocation2], %s878_s25 }
  0x77   : > { %s809_s9 = sshll.u32 %s1532_s26, 4  ;;  %s810_s9 = int_to_ptr.vmem [resolvable:$true] %s809_s9 }
  0x83   : > { %490 = vmatmul.bf16.gmra.mxu0 %v925_v56 }
  0x84   : > { %539 = vmatmul.bf16.gmra.mxu1 %v929_v57 }
  0x93   : > { %495 = vmatmul.bf16.gmra.mxu0 %v933_v21 }
  0x94   : > { %544 = vmatmul.bf16.gmra.mxu1 %v937_v22 }
  0xa3   : > { %500 = vmatmul.bf16.gmra.mxu0 %v941_v46 }
  0xa4   : > { %549 = vmatmul.bf16.gmra.mxu1 %v945_v47 }
  0xb0   : > { %v466_v48 = vpop.f32.mrf.mxu0 }
  0xb1   : > { %v515_v49 = vpop.f32.mrf.mxu1  ;;  %v467_v51 = vadd.f32 %v1502_v50, %v466_v48 }
  0xb3   : > { %v516_v55 = vadd.f32 %v515_v49, %v467_v51 }
  0xb8   : > { %v468_v52 = vpop.f32.mrf.mxu0 }
  0xb9   : > { %v517_v53 = vpop.f32.mrf.mxu1  ;;  %v469_v54 = vadd.f32 %v1502_v50, %v468_v52 }
  0xbb   : > { %v518_v56 = vadd.f32 %v517_v53, %v469_v54 }
  0xbd   : > { %v555_v57 = vpack.c.bf16 %v518_v56, %v516_v55 }
  0xbf   : > { %673 = vmatmul.bf16.vlgmr.msra.gmra.mxu2 %v555_v57  ;;  %722 = vmatmul.bf16.vlgmr.msra.gmra.mxu3 %v555_v57 }
  0xc0   : > { %v471_v58 = vpop.f32.mrf.mxu0 }
  0xc1   : > { %v520_v59 = vpop.f32.mrf.mxu1  ;;  %v472_v60 = vadd.f32 %v1502_v50, %v471_v58  ;;  %v579_v58 = vld [vmem:[%s1634_s4] sm:$0x3] }
  0xc3   : > { %v521_v0 = vadd.f32 %v520_v59, %v472_v60  ;;  %v1526_v59 = vperm.slane %v579_v58, 0  ;;  %v1528_v60 = vperm.slane %v579_v58, 1 }
  0xc8   : > { %v473_v61 = vpop.f32.mrf.mxu0 }
  0xc9   : > { %v522_v62 = vpop.f32.mrf.mxu1  ;;  %v474_v63 = vadd.f32 %v1502_v50, %v473_v61 }
  0xcb   : > { %v523_v1 = vadd.f32 %v522_v62, %v474_v63 }
  0xcd   : > { %v556_v2 = vpack.c.bf16 %v523_v1, %v521_v0 }
  0xcf   : > { %678 = vmatmul.bf16.gmra.mxu2 %v556_v2  ;;  %727 = vmatmul.bf16.gmra.mxu3 %v556_v2 }
  0xd0   : > { %v476_v3 = vpop.f32.mrf.mxu0 }
  0xd1   : > { %v525_v4 = vpop.f32.mrf.mxu1  ;;  %v477_v5 = vadd.f32 %v1502_v50, %v476_v3 }
  0xd3   : > { %v526_v9 = vadd.f32 %v525_v4, %v477_v5 }
  0xd8   : > { %v478_v6 = vpop.f32.mrf.mxu0 }
  0xd9   : > { %v527_v7 = vpop.f32.mrf.mxu1  ;;  %v479_v8 = vadd.f32 %v1502_v50, %v478_v6 }
  0xdb   : > { %v528_v10 = vadd.f32 %v527_v7, %v479_v8 }
  0xdd   : > { %v557_v11 = vpack.c.bf16 %v528_v10, %v526_v9 }
  0xdf   : > { %683 = vmatmul.bf16.gmra.mxu2 %v557_v11  ;;  %732 = vmatmul.bf16.gmra.mxu3 %v557_v11 }
  0xe0   : > { %v481_v12 = vpop.f32.mrf.mxu0 }
  0xe1   : > { %v530_v13 = vpop.f32.mrf.mxu1  ;;  %v482_v14 = vadd.f32 %v1502_v50, %v481_v12 }
  0xe3   : > { %v531_v18 = vadd.f32 %v530_v13, %v482_v14 }
  0xe8   : > { %v483_v15 = vpop.f32.mrf.mxu0 }
  0xe9   : > { %v532_v16 = vpop.f32.mrf.mxu1  ;;  %v484_v17 = vadd.f32 %v1502_v50, %v483_v15 }
  0xeb   : > { %v533_v19 = vadd.f32 %v532_v16, %v484_v17 }
  0xed   : > { %v558_v20 = vpack.c.bf16 %v533_v19, %v531_v18 }
  0xef   : > { %688 = vmatmul.bf16.gmra.mxu2 %v558_v20  ;;  %737 = vmatmul.bf16.gmra.mxu3 %v558_v20 }
  0xf0   : > { %v486_v21 = vpop.f32.mrf.mxu0 }
  0xf1   : > { %v535_v22 = vpop.f32.mrf.mxu1  ;;  %v487_v23 = vadd.f32 %v1502_v50, %v486_v21 }
  0xf3   : > { %v536_v27 = vadd.f32 %v535_v22, %v487_v23 }
  0xf8   : > { %v488_v24 = vpop.f32.mrf.mxu0 }
  0xf9   : > { %v537_v25 = vpop.f32.mrf.mxu1  ;;  %v489_v26 = vadd.f32 %v1502_v50, %v488_v24 }
  0xfb   : > { %v538_v28 = vadd.f32 %v537_v25, %v489_v26 }
  0xfd   : > { %v559_v29 = vpack.c.bf16 %v538_v28, %v536_v27 }
  0xff   : > { %693 = vmatmul.bf16.gmra.mxu2 %v559_v29  ;;  %742 = vmatmul.bf16.gmra.mxu3 %v559_v29 }
 0x100   : > { %v491_v30 = vpop.f32.mrf.mxu0 }
 0x101   : > { %v540_v31 = vpop.f32.mrf.mxu1  ;;  %v492_v32 = vadd.f32 %v1502_v50, %v491_v30 }
 0x103   : > { %v541_v36 = vadd.f32 %v540_v31, %v492_v32 }
 0x108   : > { %v493_v33 = vpop.f32.mrf.mxu0 }
 0x109   : > { %v542_v34 = vpop.f32.mrf.mxu1  ;;  %v494_v35 = vadd.f32 %v1502_v50, %v493_v33 }
 0x10b   : > { %v543_v37 = vadd.f32 %v542_v34, %v494_v35 }
 0x10d   : > { %v560_v38 = vpack.c.bf16 %v543_v37, %v541_v36 }
 0x10f   : > { %698 = vmatmul.bf16.gmra.mxu2 %v560_v38  ;;  %747 = vmatmul.bf16.gmra.mxu3 %v560_v38 }
 0x110   : > { %v496_v39 = vpop.f32.mrf.mxu0 }
 0x111   : > { %v545_v40 = vpop.f32.mrf.mxu1  ;;  %v497_v41 = vadd.f32 %v1502_v50, %v496_v39 }
 0x113   : > { %v546_v45 = vadd.f32 %v545_v40, %v497_v41 }
 0x118   : > { %v498_v42 = vpop.f32.mrf.mxu0 }
 0x119   : > { %v547_v43 = vpop.f32.mrf.mxu1  ;;  %v499_v44 = vadd.f32 %v1502_v50, %v498_v42 }
 0x11b   : > { %v548_v46 = vadd.f32 %v547_v43, %v499_v44 }
 0x11d   : > { %v561_v47 = vpack.c.bf16 %v548_v46, %v546_v45 }
 0x11f   : > { %703 = vmatmul.bf16.gmra.mxu2 %v561_v47  ;;  %752 = vmatmul.bf16.gmra.mxu3 %v561_v47 }
 0x120   : > { %v501_v48 = vpop.f32.mrf.mxu0 }
 0x121   : > { %v550_v49 = vpop.f32.mrf.mxu1  ;;  %v502_v51 = vadd.f32 %v1502_v50, %v501_v48 }
 0x123   : > { %v551_v55 = vadd.f32 %v550_v49, %v502_v51 }
 0x128   : > { %v503_v52 = vpop.f32.mrf.mxu0 }
 0x129   : > { %v504_v53 = vadd.f32 %v1502_v50, %v503_v52  ;;  %v552_v54 = vpop.f32.mrf.mxu1 }
 0x12b   : > { %v553_v56 = vadd.f32 %v552_v54, %v504_v53 }
 0x12d   : > { %v562_v57 = vpack.c.bf16 %v553_v56, %v551_v55 }
 0x12f   : > { %708 = vmatmul.bf16.gmra.mxu2 %v562_v57  ;;  %757 = vmatmul.bf16.gmra.mxu3 %v562_v57 }
 0x142   : > { %v674_v61 = vpop.f32.mrf.mxu2  ;;  %v723_v62 = vpop.f32.mrf.mxu3 }
 0x143   : > { %v675_v50 = vadd.f32 %v674_v61, %v1526_v59  ;;  %v724_v63 = vadd.f32 %v723_v62, %v1528_v60 }
 0x145   : > { %763 = vst [vmem:[%s1532_s26] sm:$0xff] %v675_v50 }
 0x146   : > { %764 = vst [vmem:[%s1532_s26 + $0x8] sm:$0xff] %v724_v63 }
 0x14a   : > { %v676_v0 = vpop.f32.mrf.mxu2  ;;  %v725_v1 = vpop.f32.mrf.mxu3 }
 0x14b   : > { %v677_v2 = vadd.f32 %v676_v0, %v1526_v59  ;;  %v726_v3 = vadd.f32 %v725_v1, %v1528_v60 }
 0x14d   : > { %765 = vst [vmem:[%s1532_s26 + $0x10] sm:$0xff] %v677_v2 }
 0x14e   : > { %766 = vst [vmem:[%s1532_s26 + $0x18] sm:$0xff] %v726_v3 }
 0x152   : > { %v679_v4 = vpop.f32.mrf.mxu2  ;;  %v728_v5 = vpop.f32.mrf.mxu3 }
 0x153   : > { %v680_v6 = vadd.f32 %v679_v4, %v1526_v59  ;;  %v729_v7 = vadd.f32 %v728_v5, %v1528_v60 }
 0x155   : > { %767 = vst [vmem:[%s1532_s26 + $0x20] sm:$0xff] %v680_v6 }
 0x156   : > { %768 = vst [vmem:[%s1532_s26 + $0x28] sm:$0xff] %v729_v7 }
 0x15a   : > { %v681_v8 = vpop.f32.mrf.mxu2  ;;  %v730_v9 = vpop.f32.mrf.mxu3 }
 0x15b   : > { %v682_v10 = vadd.f32 %v681_v8, %v1526_v59  ;;  %v731_v11 = vadd.f32 %v730_v9, %v1528_v60 }
 0x15d   : > { %769 = vst [vmem:[%s1532_s26 + $0x30] sm:$0xff] %v682_v10 }
 0x15e   : > { %770 = vst [vmem:[%s1532_s26 + $0x38] sm:$0xff] %v731_v11 }
 0x162   : > { %v684_v12 = vpop.f32.mrf.mxu2  ;;  %v733_v13 = vpop.f32.mrf.mxu3 }
 0x163   : > { %v685_v14 = vadd.f32 %v684_v12, %v1526_v59  ;;  %v734_v15 = vadd.f32 %v733_v13, %v1528_v60 }
 0x165   : > { %771 = vst [vmem:[%s1532_s26 + $0x40] sm:$0xff] %v685_v14 }
 0x166   : > { %772 = vst [vmem:[%s1532_s26 + $0x48] sm:$0xff] %v734_v15 }
 0x16a   : > { %v686_v16 = vpop.f32.mrf.mxu2  ;;  %v735_v17 = vpop.f32.mrf.mxu3 }
 0x16b   : > { %v687_v18 = vadd.f32 %v686_v16, %v1526_v59  ;;  %v736_v19 = vadd.f32 %v735_v17, %v1528_v60 }
 0x16d   : > { %773 = vst [vmem:[%s1532_s26 + $0x50] sm:$0xff] %v687_v18 }
 0x16e   : > { %774 = vst [vmem:[%s1532_s26 + $0x58] sm:$0xff] %v736_v19 }
 0x172   : > { %v689_v20 = vpop.f32.mrf.mxu2  ;;  %v738_v21 = vpop.f32.mrf.mxu3 }
 0x173   : > { %v690_v22 = vadd.f32 %v689_v20, %v1526_v59  ;;  %v739_v23 = vadd.f32 %v738_v21, %v1528_v60 }
 0x175   : > { %775 = vst [vmem:[%s1532_s26 + $0x60] sm:$0xff] %v690_v22 }
 0x176   : > { %776 = vst [vmem:[%s1532_s26 + $0x68] sm:$0xff] %v739_v23 }
 0x17a   : > { %v691_v24 = vpop.f32.mrf.mxu2  ;;  %v740_v25 = vpop.f32.mrf.mxu3 }
 0x17b   : > { %v692_v26 = vadd.f32 %v691_v24, %v1526_v59  ;;  %v741_v27 = vadd.f32 %v740_v25, %v1528_v60 }
 0x17d   : > { %777 = vst [vmem:[%s1532_s26 + $0x70] sm:$0xff] %v692_v26 }
 0x17e   : > { %778 = vst [vmem:[%s1532_s26 + $0x78] sm:$0xff] %v741_v27 }
 0x182   : > { %v694_v28 = vpop.f32.mrf.mxu2  ;;  %v743_v29 = vpop.f32.mrf.mxu3 }
 0x183   : > { %v695_v30 = vadd.f32 %v694_v28, %v1526_v59  ;;  %v744_v31 = vadd.f32 %v743_v29, %v1528_v60 }
 0x185   : > { %779 = vst [vmem:[%s1532_s26 + $0x80] sm:$0xff] %v695_v30 }
 0x186   : > { %780 = vst [vmem:[%s1532_s26 + $0x88] sm:$0xff] %v744_v31 }
 0x18a   : > { %v696_v32 = vpop.f32.mrf.mxu2  ;;  %v745_v33 = vpop.f32.mrf.mxu3 }
 0x18b   : > { %v697_v34 = vadd.f32 %v696_v32, %v1526_v59  ;;  %v746_v35 = vadd.f32 %v745_v33, %v1528_v60 }
 0x18d   : > { %781 = vst [vmem:[%s1532_s26 + $0x90] sm:$0xff] %v697_v34 }
 0x18e   : > { %782 = vst [vmem:[%s1532_s26 + $0x98] sm:$0xff] %v746_v35 }
 0x192   : > { %v699_v36 = vpop.f32.mrf.mxu2  ;;  %v748_v37 = vpop.f32.mrf.mxu3 }
 0x193   : > { %v700_v38 = vadd.f32 %v699_v36, %v1526_v59  ;;  %v749_v39 = vadd.f32 %v748_v37, %v1528_v60 }
 0x195   : > { %783 = vst [vmem:[%s1532_s26 + $0xa0] sm:$0xff] %v700_v38 }
 0x196   : > { %784 = vst [vmem:[%s1532_s26 + $0xa8] sm:$0xff] %v749_v39 }
 0x19a   : > { %v701_v40 = vpop.f32.mrf.mxu2  ;;  %v750_v41 = vpop.f32.mrf.mxu3 }
 0x19b   : > { %v702_v42 = vadd.f32 %v701_v40, %v1526_v59  ;;  %v751_v43 = vadd.f32 %v750_v41, %v1528_v60 }
 0x19d   : > { %785 = vst [vmem:[%s1532_s26 + $0xb0] sm:$0xff] %v702_v42 }
 0x19e   : > { %786 = vst [vmem:[%s1532_s26 + $0xb8] sm:$0xff] %v751_v43 }
 0x1a2   : > { %v704_v44 = vpop.f32.mrf.mxu2  ;;  %v753_v45 = vpop.f32.mrf.mxu3 }
 0x1a3   : > { %v705_v46 = vadd.f32 %v704_v44, %v1526_v59  ;;  %v754_v47 = vadd.f32 %v753_v45, %v1528_v60 }
 0x1a5   : > { %787 = vst [vmem:[%s1532_s26 + $0xc0] sm:$0xff] %v705_v46 }
 0x1a6   : > { %788 = vst [vmem:[%s1532_s26 + $0xc8] sm:$0xff] %v754_v47 }
 0x1aa   : > { %v706_v48 = vpop.f32.mrf.mxu2  ;;  %v755_v49 = vpop.f32.mrf.mxu3 }
 0x1ab   : > { %v707_v51 = vadd.f32 %v706_v48, %v1526_v59  ;;  %v756_v52 = vadd.f32 %v755_v49, %v1528_v60 }
 0x1ad   : > { %789 = vst [vmem:[%s1532_s26 + $0xd0] sm:$0xff] %v707_v51 }
 0x1ae   : > { %790 = vst [vmem:[%s1532_s26 + $0xd8] sm:$0xff] %v756_v52 }
 0x1b2   : > { %v709_v53 = vpop.f32.mrf.mxu2  ;;  %v758_v54 = vpop.f32.mrf.mxu3 }
 0x1b3   : > { %v710_v55 = vadd.f32 %v709_v53, %v1526_v59  ;;  %v759_v56 = vadd.f32 %v758_v54, %v1528_v60 }
 0x1b5   : > { %791 = vst [vmem:[%s1532_s26 + $0xe0] sm:$0xff] %v710_v55 }
 0x1b6   : > { %792 = vst [vmem:[%s1532_s26 + $0xe8] sm:$0xff] %v759_v56 }
 0x1ba   : > { %v711_v57 = vpop.f32.mrf.mxu2  ;;  %v760_v58 = vpop.f32.mrf.mxu3 }
 0x1bb   : > { %v712_v61 = vadd.f32 %v711_v57, %v1526_v59  ;;  %v761_v62 = vadd.f32 %v760_v58, %v1528_v60 }
 0x1bd   : > { %793 = vst [vmem:[%s1532_s26 + $0xf0] sm:$0xff] %v712_v61 }
 0x1be   : > { %794 = vst [vmem:[%s1532_s26 + $0xf8] sm:$0xff] %v761_v62 }
 0x1bf   : > { %1200 = shalt.err (!%p1197_p3)
}
 0x1c0   : > { %s1237_s6 = smov 256   ;;  %s1238_s25 = smov 16  }
 0x1c1   : > { %1131 = dma.vmem_to_hbm [thread:$0]  (%p1307_p5), %s810_s9, 4096, %s812_s10, %s796_s22, %s1237_s6, %s1237_s6, %s1238_s25  }
 0x1c2 PF: > { %p1137_p4 = scmp.ge.s32.totalorder %s1235_s21, 2  ;;  %s826_s26 = sand.u32 1, %s1223_s18  }
 0x1c3   : > { %s827_s30 = scalar_lea.sflag [#allocation3], %s826_s26 }
 0x1c4   : > { %p1134_p7 = pnand %p1137_p4, %p1311_p6 }
 0x1c6   : > { %p1135_p8 = pneg %p1134_p7 }
 0x1c8   : > { %1218 = dma.done.wait (%p1135_p8), %s827_s30, 4096  }
 0x1c9   : > { %1220 = vsyncadd (%p1135_p8), %s827_s30, 4294963200  ;;  %p15_p9 = scmp.ge.s32.totalorder %s1294_s24, 6   ;;  %s1638_s18 = smov %s1227_s19 }
 0x1ca   : > { %s1639_s19 = smov %s1231_s20  ;;  %s1640_s20 = smov %s1305_s27 }
 0x1cb   : > { %s1641_s21 = smov %s1294_s24  ;;  %17 = sbr.rel (!%p15_p9) target bundleno = 3 (0x3), region = 75 }
 0x1d0   :  { %833 = vsyncpa [#allocation3], 1 }
 0x1d1   :  { %835 = vsyncpa [#allocation3 + $0x1], 1 }

</bundles_post_ra>
